<compile_context>
chip_gen: v7x
topology: tpu7x:2x2x1
jax: 0.10.0
libtpu: 0.0.40
codegen_flags: <defaults>
</compile_context>

<pallas_src>
import jax
import jax.numpy as jnp
import numpy as np
from jax.experimental import pallas as pl
from jax.experimental.pallas import tpu as pltpu


# ----------------------------- Pallas kernel -------------------------------

def _fused_affine_kernel(x_ref, a_ref, b_ref, out_ref):
    """y = x * a + b on one (tile_b, tile_d) block.

    x_ref:   (tile_b, tile_d)  input (f32 or bf16)
    a_ref:   (1, tile_d)       fused scale slice (resident across batch tiles)
    b_ref:   (1, tile_d)       fused bias slice
    out_ref: (tile_b, tile_d)  output (same dtype as input)
    """
    x = x_ref[...].astype(jnp.float32)
    a = a_ref[...].astype(jnp.float32)
    b = b_ref[...].astype(jnp.float32)
    out_ref[...] = (x * a + b).astype(out_ref.dtype)


# --------------------------- Tiling / chip picks ----------------------------

def _tile_targets():
    """(tile_b_target, tile_d_target, vmem_limit_bytes, multi_core) per chip."""
    try:
        kind = jax.devices()[0].device_kind.lower()
    except Exception:
        kind = ""
    if "v5 lite" in kind or "v5e" in kind or "v5lite" in kind:
        # ~2 MiB f32 blocks; 2 in + 2 out double-buffers = 8 MiB < 16 MiB default.
        return 256, 2048, None, False
    if "v6" in kind:
        # ~4 MiB f32 blocks; 16 MiB of buffers fits the 32 MiB default scoped VMEM.
        return 512, 2048, None, False
    if "7" in kind:
        # v7x: 64 MiB physical VMEM, 3.2 TB/s HBM -> ~8 MiB blocks + explicit limit.
        return 512, 4096, 48 << 20, True
    # Unknown chip: conservative (v5e-safe) defaults.
    return 256, 2048, None, False


def _pick_tile(dim: int, target: int, align: int) -> int:
    """Fixed tile (multiple of `align`) <= target; full dim when it fits."""
    if dim <= target:
        return dim                           # full-dim block is always legal
    return max(align, (target // align) * align)


def _affine_flow_pallas(x_flat, a_flat, b_flat):
    """x_flat: (B, D); a_flat/b_flat: (1, D). Returns x_flat * a + b, (B, D)."""
    B, D = x_flat.shape
    tile_b_target, tile_d_target, vmem_limit, multi_core = _tile_targets()

    # bf16 packs 16 rows per sublane group; keep bf16 batch tiles 16-aligned.
    b_align = 16 if x_flat.dtype == jnp.bfloat16 else 8
    tile_b = _pick_tile(B, tile_b_target, b_align)
    tile_d = _pick_tile(D, tile_d_target, 128)
    grid_d = pl.cdiv(D, tile_d)
    grid_b = pl.cdiv(B, tile_b)

    # v7x has 2 TensorCores: make sure there are >=2 grid points to shard.
    if multi_core and grid_d * grid_b < 2:
        if D >= 256:
            tile_d = max(128, ((pl.cdiv(D, 2) + 127) // 128) * 128)
        elif B >= 2 * b_align:
            tile_b = max(b_align,
                         ((pl.cdiv(B, 2) + b_align - 1) // b_align) * b_align)
        grid_d = pl.cdiv(D, tile_d)
        grid_b = pl.cdiv(B, tile_b)

    # Batch axis innermost so the (1, tile_d) a/b blocks keep the same block
    # index across consecutive grid steps -> stay resident in VMEM.
    grid = (grid_d, grid_b)

    cp_kwargs = dict(dimension_semantics=("parallel", "parallel"))
    if vmem_limit is not None:
        cp_kwargs["vmem_limit_bytes"] = vmem_limit

    bytes_accessed = (2 * B * D * x_flat.dtype.itemsize
                      + 2 * D * a_flat.dtype.itemsize)
    cost = pl.CostEstimate(flops=2 * B * D, transcendentals=0,
                           bytes_accessed=bytes_accessed)

    out = pl.pallas_call(
        _fused_affine_kernel,
        grid=grid,
        in_specs=[
            pl.BlockSpec((tile_b, tile_d), lambda d, b: (b, d)),
            pl.BlockSpec((1, tile_d), lambda d, b: (0, d)),
            pl.BlockSpec((1, tile_d), lambda d, b: (0, d)),
        ],
        out_specs=pl.BlockSpec((tile_b, tile_d), lambda d, b: (b, d)),
        out_shape=jax.ShapeDtypeStruct((B, D), x_flat.dtype),
        compiler_params=pltpu.CompilerParams(**cp_kwargs),
        cost_estimate=cost,
    )(x_flat, a_flat, b_flat)
    return out


# ------------------------------ Flow classes -------------------------------

class BaseFlow:
    def forward(self, input_, *, aux, inverse: bool):
        raise NotImplementedError

    def __str__(self):
        return self.__class__.__name__


class AffineFlow(BaseFlow):
    """Concrete base flow: per-channel affine transform on NCHW tensors.

    forward (x -> z): z = (x - t) * exp(-s),  logd = -H*W*sum(s)
    inverse (z -> x): x = z * exp(s) + t,     logd = +H*W*sum(s)
    Both directions are realized as a single fused `y = x*a + b` kernel with
    direction-specific precomputed a/b.
    """

    def __init__(self, num_channels: int):
        super().__init__()
        # Deterministic parameter init (synthetic; no checkpoint load).
        c = jnp.arange(num_channels, dtype=jnp.float32)
        self.log_scale = 0.1 * jnp.sin(c)   # (C,)
        self.bias = 0.05 * jnp.cos(c)       # (C,)
        self.num_channels = num_channels
        self._sum_log_scale = jnp.sum(self.log_scale)   # scalar, for logd
        self._param_cache = {}   # (H, W, inverse, dtype) -> (a_flat, b_flat)

    def _flat_params(self, H: int, W: int, inverse: bool, param_dtype):
        key = (H, W, bool(inverse), jnp.dtype(param_dtype).name)
        if key not in self._param_cache:
            if inverse:
                a = jnp.exp(self.log_scale)                      # (C,)
                b = self.bias
            else:
                inv_scale = jnp.exp(-self.log_scale)
                a = inv_scale
                b = -self.bias * inv_scale
            D = self.num_channels * H * W
            a_flat = jnp.repeat(a, H * W).reshape(1, D).astype(param_dtype)
            b_flat = jnp.repeat(b, H * W).reshape(1, D).astype(param_dtype)
            self._param_cache[key] = (a_flat, b_flat)
        return self._param_cache[key]

    def forward(self, input_, *, aux, inverse: bool):
        # layout: NCHW in / NCHW out, matching the PyTorch convention.
        B, C, H, W = input_.shape
        assert C == self.num_channels
        D = C * H * W
        x_flat = input_.reshape(B, D)
        # bf16 params halve the residual parameter traffic on the bf16 I/O path.
        param_dtype = jnp.bfloat16 if x_flat.dtype == jnp.bfloat16 else jnp.float32
        a_flat, b_flat = self._flat_params(H, W, inverse, param_dtype)
        out_flat = _affine_flow_pallas(x_flat, a_flat, b_flat)
        # logd is independent of x: +/- H*W * sum(log_scale), broadcast to (B,).
        sign = 1.0 if inverse else -1.0
        logd = jnp.broadcast_to(
            sign * jnp.float32(H * W) * self._sum_log_scale, (B,)
        ).astype(jnp.float32)
        return out_flat.reshape(B, C, H, W), logd


class Inverse(BaseFlow):
    """Pallas/JAX equivalent of compression/flows.py::Inverse."""

    def __init__(self, base):
        super().__init__()
        assert isinstance(base, BaseFlow)
        self.base = base

    def forward(self, input_, *, aux, inverse: bool):
        return self.base.forward(input_, aux=aux, inverse=not inverse)

    def __str__(self):
        return f'Inverse({str(self.base)})'

    # TODO(synk): `code(...)` (entropy coding via Bitstream) has no Pallas
    # equivalent; omitted.


# --------------------------------- Main -------------------------------------

if __name__ == "__main__":
    B, C, H, W = 2, 4, 16, 16
    key = jax.random.PRNGKey(0)
    x = jax.random.normal(key, (B, C, H, W), dtype=jnp.float32)

    base = AffineFlow(C)
    flow = Inverse(base)

    # Calling Inverse with inverse=False -> base runs its *inverse* direction.
    out, logd = flow.forward(x, aux=None, inverse=False)
    out = jax.block_until_ready(out)
    logd = jax.block_until_ready(logd)

    # Pure-JAX reference for the same semantics.
    s_full = jnp.repeat(base.log_scale, H * W).reshape(1, C * H * W)
    t_full = jnp.repeat(base.bias, H * W).reshape(1, C * H * W)
    x_flat = x.reshape(B, -1)
    ref_out = (x_flat * jnp.exp(s_full) + t_full).reshape(B, C, H, W)
    ref_logd = jnp.broadcast_to(jnp.sum(s_full, axis=-1), (B,))

    assert out.shape == (B, C, H, W) and logd.shape == (B,)
    np.testing.assert_allclose(np.asarray(out), np.asarray(ref_out),
                               rtol=1e-6, atol=1e-6)
    np.testing.assert_allclose(np.asarray(logd), np.asarray(ref_logd),
                               rtol=1e-5, atol=1e-6)

    # Round-trip check: Inverse(forward) followed by base(forward) reconstructs x.
    x_rec, logd_fwd = base.forward(out, aux=None, inverse=False)
    np.testing.assert_allclose(np.asarray(x_rec), np.asarray(x),
                               rtol=1e-5, atol=1e-5)
    np.testing.assert_allclose(np.asarray(logd + logd_fwd), 0.0, atol=1e-5)

    # bf16 I/O path (halves HBM traffic; compute stays f32 inside the kernel).
    out_bf16, _ = flow.forward(x.astype(jnp.bfloat16), aux=None, inverse=False)
    out_bf16 = jax.block_until_ready(out_bf16)
    np.testing.assert_allclose(np.asarray(out_bf16, dtype=np.float32),
                               np.asarray(ref_out), rtol=2e-2, atol=2e-2)

    print("KERNEL_OK")
</pallas_src>

<mosaic_0001>
module attributes {stable_mosaic.version = 11 : i64} {
  func.func @_fused_affine_kernel(%arg0: i32, %arg1: i32, %arg2: memref<2x1024xf32, #tpu.memory_space<vmem>>, %arg3: memref<1x1024xf32, #tpu.memory_space<vmem>>, %arg4: memref<1x1024xf32, #tpu.memory_space<vmem>>, %arg5: memref<2x1024xf32, #tpu.memory_space<vmem>>) attributes {dimension_semantics = [#tpu.dimension_semantics<parallel>, #tpu.dimension_semantics<parallel>], iteration_bounds = array<i64: 1, 1>, scalar_prefetch = 0 : i64, scratch_operands = 0 : i64, tpu.core_type = #tpu.core_type<tc>, window_params = [{transform_indices = @transform_0, window_bounds = array<i64: 2, 1024>}, {transform_indices = @transform_1, window_bounds = array<i64: 1, 1024>}, {transform_indices = @transform_2, window_bounds = array<i64: 1, 1024>}, {transform_indices = @transform_3, window_bounds = array<i64: 2, 1024>}]} {
    %c0 = arith.constant 0 : index
    %c0_0 = arith.constant 0 : index
    %0 = vector.load %arg2[%c0, %c0_0] : memref<2x1024xf32, #tpu.memory_space<vmem>>, vector<2x1024xf32>
    %c0_1 = arith.constant 0 : index
    %c0_2 = arith.constant 0 : index
    %1 = vector.load %arg3[%c0_1, %c0_2] : memref<1x1024xf32, #tpu.memory_space<vmem>>, vector<1x1024xf32>
    %c0_3 = arith.constant 0 : index
    %c0_4 = arith.constant 0 : index
    %2 = vector.load %arg4[%c0_3, %c0_4] : memref<1x1024xf32, #tpu.memory_space<vmem>>, vector<1x1024xf32>
    %3 = vector.broadcast %1 : vector<1x1024xf32> to vector<2x1024xf32>
    %4 = arith.mulf %0, %3 : vector<2x1024xf32>
    %5 = vector.broadcast %2 : vector<1x1024xf32> to vector<2x1024xf32>
    %6 = arith.addf %4, %5 : vector<2x1024xf32>
    %c0_5 = arith.constant 0 : index
    %c0_6 = arith.constant 0 : index
    %7 = vector.load %arg5[%c0_5, %c0_6] : memref<2x1024xf32, #tpu.memory_space<vmem>>, vector<2x1024xf32>
    tpu.vector_store %arg5[%c0_5, %c0_6], %6 {strides = array<i32>} : memref<2x1024xf32, #tpu.memory_space<vmem>>, vector<2x1024xf32>,
    return
  }
  func.func @transform_0(%arg0: i32, %arg1: i32) -> (i32, i32) {
    %c0_i32 = arith.constant 0 : i32
    return %arg1, %arg0 : i32, i32
  }
  func.func @transform_1(%arg0: i32, %arg1: i32) -> (i32, i32) {
    %c0_i32 = arith.constant 0 : i32
    %c0_i32_0 = arith.constant 0 : i32
    return %c0_i32, %arg0 : i32, i32
  }
  func.func @transform_2(%arg0: i32, %arg1: i32) -> (i32, i32) {
    %c0_i32 = arith.constant 0 : i32
    %c0_i32_0 = arith.constant 0 : i32
    return %c0_i32, %arg0 : i32, i32
  }
  func.func @transform_3(%arg0: i32, %arg1: i32) -> (i32, i32) {
    %c0_i32 = arith.constant 0 : i32
    return %arg1, %arg0 : i32, i32
  }
}

</mosaic_0001>

<bundles_post_ra>
// kernel: tpu_custom_call.1
= control target key start
LH: loop header
LB: loop body
LE: loop exit
PB: predicated region body
PF: predicated region fallthrough
CT: control target
= control target key end

     0   :  { %8 = vsyncpa [#allocation3], 0  ;;  %s386_s0 = inlined_call_operand.hbm [shape: f32[2,1024], index: 0, kind: input, shape index: {}]   ;;  %s387_s1 = inlined_call_operand.hbm [shape: f32[1,1024], index: 1, kind: input, shape index: {}]   ;;  %s388_s2 = inlined_call_operand.hbm [shape: f32[1,1024], index: 2, kind: input, shape index: {}]   ;;  %s389_s3 = inlined_call_operand.hbm [shape: f32[2,1024], index: 3, kind: output, shape index: {}]  }
   0x1   :  { %9 = vsyncpa [#allocation6], 0 }
   0x2   :  { %10 = vsyncpa [#allocation4], 0  ;;  %s313_s12 = smov [#allocation5]   ;;  %s314_s14 = smov [#allocation2]  }
   0x3   :  { %s27_s13 = sshll.u32 %s313_s12, 4  ;;  %s17_s15 = sshll.u32 %s314_s14, 4  ;;  %s28_s13 = int_to_ptr.vmem [resolvable:$true] %s27_s13  ;;  %s18_s15 = int_to_ptr.vmem [resolvable:$true] %s17_s15 }
   0x4   :  { %s219_s18 = scalar_lea.hbm %s387_s1, 128 }
   0x5   :  { %p220_p0 = scmp.ne.s32.totalorder %s387_s1, %s219_s18  ;;  %p223_p1 = scmp.lt.u32.totalorder %s219_s18, %s387_s1 }
   0x7   :  { %p225_p2 = pnand %p223_p1, %p220_p0 }
   0x9   :  { %228 = shalt.err (!%p225_p2)
}
   0xa   :  { %s229_s23 = scalar_lea.vmem %s28_s13, 128  ;;  %p234_p4 = scmp.lt.s32.totalorder %s28_s13, %s28_s13 }
   0xb   :  { %p230_p3 = scmp.ne.s32.totalorder %s28_s13, %s229_s23  ;;  %p235_p5 = scmp.lt.s32.totalorder %s229_s23, %s229_s23 }
   0xd   :  { %p236_p6 = por %p235_p5, %p234_p4 }
   0xf   :  { %p237_p7 = pnand %p236_p6, %p230_p3 }
  0x11   :  { %240 = shalt.err (!%p237_p7)
}
  0x12   :  { %30 = dma.hbm_to_vmem [thread:$0]  %s387_s1, 128, %s28_s13, [#allocation6]  }
  0x13   :  { %s241_s28 = scalar_lea.hbm %s386_s0, 256 }
  0x14   :  { %p242_p8 = scmp.ne.s32.totalorder %s386_s0, %s241_s28  ;;  %p245_p9 = scmp.lt.u32.totalorder %s241_s28, %s386_s0 }
  0x16   :  { %p247_p10 = pnand %p245_p9, %p242_p8 }
  0x18   :  { %250 = shalt.err (!%p247_p10)
}
  0x19   :  { %s251_s6 = scalar_lea.vmem %s18_s15, 256  ;;  %p256_p12 = scmp.lt.s32.totalorder %s18_s15, %s18_s15 }
  0x1a   :  { %p252_p11 = scmp.ne.s32.totalorder %s18_s15, %s251_s6  ;;  %p257_p13 = scmp.lt.s32.totalorder %s251_s6, %s251_s6 }
  0x1c   :  { %p258_p0 = por %p257_p13, %p256_p12 }
  0x1e   :  { %p259_p1 = pnand %p258_p0, %p252_p11 }
  0x20   :  { %262 = shalt.err (!%p259_p1)
}
  0x21   :  { %20 = dma.hbm_to_vmem [thread:$0]  %s386_s0, 256, %s18_s15, [#allocation3]  }
  0x22   :  { %s315_s8 = smov [#allocation7]   ;;  %s263_s12 = scalar_lea.hbm %s388_s2, 128 }
  0x23   :  { %s37_s9 = sshll.u32 %s315_s8, 4  ;;  %p264_p2 = scmp.ne.s32.totalorder %s388_s2, %s263_s12  ;;  %s38_s9 = int_to_ptr.vmem [resolvable:$true] %s37_s9 }
  0x24   :  { %p267_p3 = scmp.lt.u32.totalorder %s263_s12, %s388_s2 }
  0x26   :  { %p269_p4 = pnand %p267_p3, %p264_p2 }
  0x28   :  { %272 = shalt.err (!%p269_p4)
}
  0x29   :  { %s273_s18 = scalar_lea.vmem %s38_s9, 128  ;;  %p278_p6 = scmp.lt.s32.totalorder %s38_s9, %s38_s9 }
  0x2a   :  { %p274_p5 = scmp.ne.s32.totalorder %s38_s9, %s273_s18  ;;  %p279_p7 = scmp.lt.s32.totalorder %s273_s18, %s273_s18 }
  0x2c   :  { %p280_p8 = por %p279_p7, %p278_p6 }
  0x2e   :  { %p281_p9 = pnand %p280_p8, %p274_p5 }
  0x30   :  { %284 = shalt.err (!%p281_p9)
}
  0x31   :  { %40 = dma.hbm_to_vmem [thread:$0]  %s388_s2, 128, %s38_s9, [#allocation6]  }
  0x32   :  { %307 = dma.done.wait [#allocation3], 256  }
  0x33   :  { %308 = vsyncadd [#allocation3], 4294967040 }
  0x34   :  { %309 = dma.done.wait [#allocation6], 256  }
  0x35   :  { %310 = vsyncadd [#allocation6], 4294967040  ;;  %v55_v0 = vlaneseq  ;;  %v316_v1 = vmov 1983009808   ;;  %v52_v11 = vld [vmem:[#allocation5] sm:$0xff]  ;;  %v53_v12 = vld [vmem:[#allocation7] sm:$0xff] }
  0x36   :  { %v90_v2 = vunpack.c.l.s4 %v316_v1  ;;  %v50_v36 = vld [vmem:[#allocation2] sm:$0xff]  ;;  %v51_v49 = vld [vmem:[#allocation2 + $0x8] sm:$0xff]  ;;  %s317_s2 = smov [#allocation8]  }
  0x37   :  { %v56_v3 = vshrl.u32 %v55_v0, 7  ;;  %s204_s19 = sshll.u32 %s317_s2, 4  ;;  %s205_s19 = int_to_ptr.vmem [resolvable:$true] %s204_s19 }
  0x38   :  { %v91_v4 = vunpack.c.0.s8 %v90_v2  ;;  %s285_s20 = scalar_lea.vmem %s205_s19, 256  ;;  %p290_p11 = scmp.lt.s32.totalorder %s205_s19, %s205_s19 }
  0x39   :  { %v57_v5 = vsub.s32 0, %v56_v3  ;;  %v61_v6 = vsub.s32 1, %v56_v3  ;;  %v65_v7 = vsub.s32 2, %v56_v3  ;;  %v69_v8 = vsub.s32 3, %v56_v3  ;;  %p286_p10 = scmp.ne.s32.totalorder %s205_s19, %s285_s20  ;;  %p291_p12 = scmp.lt.s32.totalorder %s285_s20, %s285_s20 }
  0x3a   :  { %v73_v9 = vsub.s32 4, %v56_v3  ;;  %v77_v10 = vsub.s32 5, %v56_v3  ;;  %v94_v13 = vsub.s32 %v91_v4, %v56_v3  ;;  %v81_v14 = vsub.s32 6, %v56_v3 }
  0x3b   :  { %v85_v15 = vsub.s32 7, %v56_v3  ;;  %v58_v16 = vrot.slane %v52_v11, %v57_v5  ;;  %v62_v17 = vrot.slane %v52_v11, %v61_v6  ;;  %v66_v18 = vrot.slane %v52_v11, %v65_v7  ;;  %p292_p13 = por %p291_p12, %p290_p11 }
  0x3c   :  { %v70_v19 = vrot.slane %v52_v11, %v69_v8  ;;  %v129_v20 = vrot.slane %v53_v12, %v57_v5  ;;  %v133_v21 = vrot.slane %v53_v12, %v61_v6  ;;  %v137_v22 = vrot.slane %v53_v12, %v65_v7 }
  0x3d   :  { %v141_v23 = vrot.slane %v53_v12, %v69_v8  ;;  %v87_v24 = vcombine.low %v58_v16, %v62_v17  ;;  %v74_v26 = vrot.slane %v52_v11, %v73_v9  ;;  %v78_v27 = vrot.slane %v52_v11, %v77_v10  ;;  %p293_p0 = pnand %p292_p13, %p286_p10 }
  0x3e   :  { %v88_v25 = vcombine.low %v66_v18, %v70_v19  ;;  %v158_v28 = vcombine.low %v129_v20, %v133_v21  ;;  %v82_v30 = vrot.slane %v52_v11, %v81_v14  ;;  %v86_v31 = vrot.slane %v52_v11, %v85_v15 }
  0x3f   :  { %v159_v29 = vcombine.low %v137_v22, %v141_v23  ;;  %v95_v32 = vrot.slane %v87_v24, %v94_v13  ;;  %v104_v34 = vcombine.low %v74_v26, %v78_v27  ;;  %v145_v35 = vrot.slane %v53_v12, %v73_v9 }
  0x40   :  { %v102_v33 = vrot.slane %v88_v25, %v94_v13  ;;  %v166_v37 = vrot.slane %v158_v28, %v94_v13  ;;  %v105_v39 = vcombine.low %v82_v30, %v86_v31  ;;  %v149_v40 = vrot.slane %v53_v12, %v77_v10 }
  0x41   :  { %v173_v38 = vrot.slane %v159_v29, %v94_v13  ;;  %v112_v42 = vrot.slane %v104_v34, %v94_v13  ;;  %v153_v43 = vrot.slane %v53_v12, %v81_v14  ;;  %v157_v44 = vrot.slane %v53_v12, %v85_v15 }
  0x42   :  { %v103_v41 = vcombine.low %v95_v32, %v102_v33  ;;  %v119_v46 = vrot.slane %v105_v39, %v94_v13  ;;  %v175_v47 = vcombine.low %v145_v35, %v149_v40 }
  0x43   :  { %v174_v45 = vcombine.low %v166_v37, %v173_v38  ;;  %v176_v50 = vcombine.low %v153_v43, %v157_v44 }
  0x44   :  { %v123_v48 = vmul.f32 %v103_v41, %v50_v36  ;;  %v120_v51 = vcombine.low %v112_v42, %v119_v46  ;;  %v183_v52 = vrot.slane %v175_v47, %v94_v13 }
  0x45   :  { %v190_v54 = vrot.slane %v176_v50, %v94_v13 }
  0x46   :  { %v194_v53 = vadd.f32 %v174_v45, %v123_v48  ;;  %v124_v55 = vmul.f32 %v120_v51, %v51_v49 }
  0x47   :  { %v191_v56 = vcombine.low %v183_v52, %v190_v54 }
  0x48   :  { %196 = vst [vmem:[#allocation8] sm:$0xff] %v194_v53 }
  0x49   :  { %v195_v57 = vadd.f32 %v191_v56, %v124_v55 }
  0x4b   :  { %197 = vst [vmem:[#allocation8 + $0x8] sm:$0xff] %v195_v57 }
  0x4c   :  { %296 = shalt.err (!%p293_p0)
}
  0x4d   :  { %s297_s23 = scalar_lea.hbm %s389_s3, 256 }
  0x4e   :  { %p298_p1 = scmp.ne.s32.totalorder %s389_s3, %s297_s23  ;;  %p301_p2 = scmp.lt.u32.totalorder %s297_s23, %s389_s3 }
  0x50   :  { %p303_p3 = pnand %p301_p2, %p298_p1 }
  0x52   :  { %306 = shalt.err (!%p303_p3)
}
  0x53   :  { %207 = dma.vmem_to_hbm [thread:$0]  %s205_s19, 256, %s389_s3, [#allocation4]  }
  0x54   :  { %311 = dma.done.wait [#allocation4], 256  }
  0x55   :  { %312 = vsyncadd [#allocation4], 4294967040 }
  0x56   :  { %211 = vsyncpa [#allocation3], 1 }
  0x57   :  { %212 = vsyncpa [#allocation6], 1 }
  0x58   :  { %213 = vsyncpa [#allocation4], 1 }

</bundles_post_ra>
